<compile_context>
chip_gen: v7x
topology: tpu7x:2x2x1
jax: 0.10.0
libtpu: 0.0.40
codegen_flags: <defaults>
</compile_context>

<pallas_src>
import functools
import math

import jax
import jax.numpy as jnp
from jax import lax
from jax.experimental import pallas as pl
from jax.experimental.pallas import tpu as pltpu


def _sublane_align(dtype):
    """Minimum sublane multiple for this dtype (8 for f32, 16 for bf16, ...)."""
    itemsize = jnp.dtype(dtype).itemsize
    return max(8, 32 // itemsize)


def _pick_tile(dim, preferred, align):
    """Largest multiple of `align` <= preferred that divides `dim`; fall back to
    the full dim (always a legal block shape; only hit for small/odd axes)."""
    t = min(preferred, (dim // align) * align)
    while t >= align:
        if dim % t == 0:
            return t
        t -= align
    return dim


@functools.lru_cache(maxsize=1)
def _vmem_limit_bytes():
    cap = None
    try:
        cap = getattr(pltpu.get_tpu_info(), "vmem_capacity_bytes", None)
    except Exception:
        cap = None
    if not cap:
        return 48 * 1024 * 1024  # conservative: safe even on 64 MiB/TC v7x
    # leave headroom for compiler-internal scratch / double buffering
    return int(min(96 * 1024 * 1024, (cap * 3) // 4))


# ----------------------------------------------------------------------------
# Kernel 1: tiled dense linear  y = x @ W^T + b   (used for c_attn and c_proj)
# ----------------------------------------------------------------------------
def _linear_kernel_f32out(x_ref, w_ref, b_ref, o_ref):
    """f32 output: accumulate directly into the resident output block."""
    kk = pl.program_id(2)

    @pl.when(kk == 0)
    def _init():
        # bias folded into the init of the resident output block
        o_ref[...] = jnp.broadcast_to(b_ref[...], o_ref.shape)

    # x: (tm, tk), w: (tn, tk) (PyTorch layout) -> contract dim 1 of both (x @ w.T)
    o_ref[...] += lax.dot_general(
        x_ref[...], w_ref[...],
        dimension_numbers=(((1,), (1,)), ((), ())),
        preferred_element_type=jnp.float32,
    )


def _linear_kernel_scratch(x_ref, w_ref, b_ref, o_ref, acc_ref):
    """Generic (e.g. bf16) output: f32 VMEM accumulator, cast at the end."""
    kk = pl.program_id(2)

    @pl.when(kk == 0)
    def _init():
        acc_ref[...] = jnp.zeros_like(acc_ref)

    acc_ref[...] += lax.dot_general(
        x_ref[...], w_ref[...],
        dimension_numbers=(((1,), (1,)), ((), ())),
        preferred_element_type=jnp.float32,
    )

    @pl.when(kk == pl.num_programs(2) - 1)
    def _finalize():
        o_ref[...] = (acc_ref[...] + b_ref[...].astype(jnp.float32)).astype(o_ref.dtype)


def linear(x2d, weight, bias, *, tm=512, tn=512, tk=512):
    """x2d: (M, K); weight: (N, K) PyTorch-style; bias: (N,). Returns (M, N)."""
    M, K = x2d.shape
    N = weight.shape[0]
    out_dtype = x2d.dtype
    tm = _pick_tile(M, tm, _sublane_align(out_dtype))  # sublane dim of x / out
    tn = _pick_tile(N, tn, 128)                        # lane dim of out / sublane of w
    tk = _pick_tile(K, tk, 128)                        # lane dim of x / w
    b2 = bias.reshape(1, N)
    grid = (M // tm, N // tn, K // tk)

    f32_out = jnp.dtype(out_dtype) == jnp.dtype(jnp.float32)
    kernel = _linear_kernel_f32out if f32_out else _linear_kernel_scratch
    scratch = [] if f32_out else [pltpu.VMEM((tm, tn), jnp.float32)]

    cost = pl.CostEstimate(
        flops=2 * M * N * K,
        transcendentals=0,
        bytes_accessed=(M * K + N * K + M * N + N) * jnp.dtype(out_dtype).itemsize,
    )
    return pl.pallas_call(
        kernel,
        out_shape=jax.ShapeDtypeStruct((M, N), out_dtype),
        grid_spec=pltpu.PrefetchScalarGridSpec(
            num_scalar_prefetch=0,
            grid=grid,
            in_specs=[
                pl.BlockSpec((tm, tk), lambda i, j, k: (i, k)),   # activations
                pl.BlockSpec((tn, tk), lambda i, j, k: (j, k)),   # weight (N, K)
                pl.BlockSpec((1, tn), lambda i, j, k: (0, j)),    # bias
            ],
            out_specs=pl.BlockSpec((tm, tn), lambda i, j, k: (i, j)),
            scratch_shapes=scratch,
        ),
        compiler_params=pltpu.CompilerParams(
            dimension_semantics=("parallel", "parallel", "arbitrary"),
            vmem_limit_bytes=_vmem_limit_bytes(),
        ),
        cost_estimate=cost,
    )(x2d, weight, b2)


# ----------------------------------------------------------------------------
# Kernel 2: flash-style causal attention, head on the grid
# ----------------------------------------------------------------------------
def _flash_attn_kernel(q_ref, k_ref, v_ref, o_ref, m_ref, l_ref, acc_ref,
                       *, tq, tk, scale):
    qi = pl.program_id(2)
    ki = pl.program_id(3)

    @pl.when(ki == 0)
    def _init():
        m_ref[...] = jnp.full(m_ref.shape, -jnp.inf, dtype=jnp.float32)
        l_ref[...] = jnp.zeros_like(l_ref)
        acc_ref[...] = jnp.zeros_like(acc_ref)

    def _block(masked):
        # Per-head ref loads: live set is (tq,hs)+(tk,hs)+(tq,tk) only.
        qh = q_ref[0, 0, :, :] * scale          # 1/sqrt(hs) folded into q
        kh = k_ref[0, 0, :, :]                  # (tk, hs) native dtype
        vh = v_ref[0, 0, :, :]                  # (tk, hs)

        s = lax.dot_general(
            qh, kh, (((1,), (1,)), ((), ())),
            preferred_element_type=jnp.float32)                    # (tq, tk) f32
        if masked:
            row = qi * tq + lax.broadcasted_iota(jnp.int32, (tq, tk), 0)
            col = ki * tk + lax.broadcasted_iota(jnp.int32, (tq, tk), 1)
            s = jnp.where(col <= row, s, -jnp.inf)

        m_prev = m_ref[...]
        m_new = jnp.maximum(m_prev, jnp.max(s, axis=-1, keepdims=True))
        alpha = jnp.exp(m_prev - m_new)                            # (tq, 1)
        p = jnp.exp(s - m_new)                                     # (tq, tk)
        l_ref[...] = alpha * l_ref[...] + jnp.sum(p, axis=-1, keepdims=True)
        pv = lax.dot_general(
            p.astype(vh.dtype), vh, (((1,), (0,)), ((), ())),
            preferred_element_type=jnp.float32)                    # (tq, hs)
        acc_ref[...] = alpha * acc_ref[...] + pv
        m_ref[...] = m_new

    # Interior (fully unmasked) blocks: no iota / compare / where.
    @pl.when(ki < qi)
    def _interior():
        _block(masked=False)

    # Diagonal block is the only one that needs the causal mask (tq == tk).
    @pl.when(ki == qi)
    def _diag():
        _block(masked=True)

    # (ki > qi) blocks are skipped entirely; their K/V index maps are clamped
    # so no DMA is issued for them either.

    @pl.when(ki == pl.num_programs(3) - 1)
    def _finalize():
        # exact divide for parity with the reference softmax
        o_ref[0, 0, :, :] = (acc_ref[...] / l_ref[...]).astype(o_ref.dtype)


def flash_causal_attention(q, k, v):
    """q, k, v: (B, nh, T, hs). Returns attention output in (B, nh, T, hs)."""
    B, nh, T, hs = q.shape
    tq = _pick_tile(T, 256, _sublane_align(q.dtype))
    tk = tq                                   # clamped K/V index maps assume tq == tk
    nq, nk = T // tq, T // tk
    scale = 1.0 / math.sqrt(hs)

    kernel = functools.partial(_flash_attn_kernel, tq=tq, tk=tk, scale=scale)

    q_spec = pl.BlockSpec((1, 1, tq, hs), lambda b, h, qi, ki: (b, h, qi, 0))
    # Clamp the kv block index for causally-skipped (ki > qi) steps: same block
    # index as the previous step -> Pallas skips the re-fetch (no wasted HBM BW).
    k_spec = pl.BlockSpec((1, 1, tk, hs),
                          lambda b, h, qi, ki: (b, h, jnp.minimum(ki, qi), 0))
    v_spec = pl.BlockSpec((1, 1, tk, hs),
                          lambda b, h, qi, ki: (b, h, jnp.minimum(ki, qi), 0))
    o_spec = pl.BlockSpec((1, 1, tq, hs), lambda b, h, qi, ki: (b, h, qi, 0))

    itemsize = jnp.dtype(q.dtype).itemsize
    cost = pl.CostEstimate(
        flops=2 * B * nh * T * T * hs,          # causal ~half of the dense 4*B*nh*T*T*hs
        transcendentals=B * nh * T * T // 2,
        bytes_accessed=4 * B * nh * T * hs * itemsize,
    )
    return pl.pallas_call(
        kernel,
        out_shape=jax.ShapeDtypeStruct((B, nh, T, hs), q.dtype),
        grid_spec=pltpu.PrefetchScalarGridSpec(
            num_scalar_prefetch=0,
            grid=(B, nh, nq, nk),
            in_specs=[q_spec, k_spec, v_spec],
            out_specs=o_spec,
            scratch_shapes=[
                pltpu.VMEM((tq, 1), jnp.float32),    # running row max  m
                pltpu.VMEM((tq, 1), jnp.float32),    # running row sum  l
                pltpu.VMEM((tq, hs), jnp.float32),   # output accumulator
            ],
        ),
        compiler_params=pltpu.CompilerParams(
            dimension_semantics=("parallel", "parallel", "parallel", "arbitrary"),
            vmem_limit_bytes=_vmem_limit_bytes(),
        ),
        cost_estimate=cost,
    )(q, k, v)


# ----------------------------------------------------------------------------
# Full CausalSelfAttention forward (layer_past=None, dropout=0 / eval)
# ----------------------------------------------------------------------------
def causal_self_attention(x, params, n_head):
    """
    x: (B, T, C).
    params: 'w_attn' (3C, C), 'b_attn' (3C,), 'w_proj' (C, C), 'b_proj' (C,)
    Returns (y, (k, v)) matching the PyTorch module:
      y: (B, T, C);  k, v: (B, n_head, T, C // n_head)
    """
    B, T, C = x.shape
    hs = C // n_head

    # c_attn: (B*T, C) -> (B*T, 3C)
    qkv = linear(x.reshape(B * T, C), params["w_attn"], params["b_attn"])
    qkv = qkv.reshape(B, T, 3, n_head, hs)

    # (B, nh, T, hs) layout: required anyway for the returned KV cache; lets the
    # attention kernel use standard per-head blocks with hs as the full lane dim.
    q = jnp.transpose(qkv[:, :, 0], (0, 2, 1, 3))
    k = jnp.transpose(qkv[:, :, 1], (0, 2, 1, 3))
    v = jnp.transpose(qkv[:, :, 2], (0, 2, 1, 3))

    y = flash_causal_attention(q, k, v)                      # (B, nh, T, hs)

    # c_proj
    y = jnp.transpose(y, (0, 2, 1, 3)).reshape(B * T, C)
    y = linear(y, params["w_proj"], params["b_proj"]).reshape(B, T, C)

    # attn_dropout / resid_dropout are identity (dropout == 0 / eval mode)
    return y, (k, v)


# ----------------------------------------------------------------------------
# Pure-JAX reference for sanity checking
# ----------------------------------------------------------------------------
def _reference(x, params, n_head):
    B, T, C = x.shape
    hs = C // n_head
    qkv = x @ params["w_attn"].T + params["b_attn"]
    q, k, v = jnp.split(qkv, 3, axis=2)
    q = q.reshape(B, T, n_head, hs).transpose(0, 2, 1, 3)
    k = k.reshape(B, T, n_head, hs).transpose(0, 2, 1, 3)
    v = v.reshape(B, T, n_head, hs).transpose(0, 2, 1, 3)
    s = jnp.einsum("bhqd,bhkd->bhqk", q, k) / math.sqrt(hs)
    mask = jnp.tril(jnp.ones((T, T), dtype=bool))
    s = jnp.where(mask, s, -jnp.inf)
    p = jax.nn.softmax(s, axis=-1)
    y = jnp.einsum("bhqk,bhkd->bhqd", p, v)
    y = y.transpose(0, 2, 1, 3).reshape(B, T, C)
    y = y @ params["w_proj"].T + params["b_proj"]
    return y, (k, v)


if __name__ == "__main__":
    # small config consistent with the module: n_embd % n_head == 0
    B, T = 2, 8
    n_embd, n_head = 32, 4

    key = jax.random.PRNGKey(0)
    kx, k1, k2, k3, k4 = jax.random.split(key, 5)

    x = jax.random.normal(kx, (B, T, n_embd), dtype=jnp.float32)

    scale = 0.02
    params = {
        "w_attn": scale * jax.random.normal(k1, (3 * n_embd, n_embd), jnp.float32),
        "b_attn": scale * jax.random.normal(k2, (3 * n_embd,), jnp.float32),
        "w_proj": scale * jax.random.normal(k3, (n_embd, n_embd), jnp.float32),
        "b_proj": scale * jax.random.normal(k4, (n_embd,), jnp.float32),
    }

    fwd = jax.jit(functools.partial(causal_self_attention, n_head=n_head))
    y, (k_out, v_out) = fwd(x, params)
    jax.block_until_ready((y, k_out, v_out))

    # sanity check against pure-JAX reference
    y_ref, (k_ref, v_ref) = _reference(x, params, n_head)
    assert y.shape == (B, T, n_embd)
    assert k_out.shape == (B, n_head, T, n_embd // n_head)
    assert v_out.shape == (B, n_head, T, n_embd // n_head)
    assert jnp.allclose(k_out, k_ref, atol=1e-5, rtol=1e-5)
    assert jnp.allclose(v_out, v_ref, atol=1e-5, rtol=1e-5)
    assert jnp.allclose(y, y_ref, atol=1e-5, rtol=1e-4)

    print("KERNEL_OK")
</pallas_src>

<mosaic_0001>
module attributes {stable_mosaic.version = 11 : i64} {
  func.func @_linear_kernel_f32out(%arg0: i32, %arg1: i32, %arg2: i32, %arg3: memref<16x32xf32, #tpu.memory_space<vmem>>, %arg4: memref<96x32xf32, #tpu.memory_space<vmem>>, %arg5: memref<1x96xf32, #tpu.memory_space<vmem>>, %arg6: memref<16x96xf32, #tpu.memory_space<vmem>>) attributes {dimension_semantics = [#tpu.dimension_semantics<parallel>, #tpu.dimension_semantics<parallel>, #tpu.dimension_semantics<arbitrary>], iteration_bounds = array<i64: 1, 1, 1>, scalar_prefetch = 0 : i64, scratch_operands = 0 : i64, tpu.core_type = #tpu.core_type<tc>, window_params = [{transform_indices = @transform_0, window_bounds = array<i64: 16, 32>}, {transform_indices = @transform_1, window_bounds = array<i64: 96, 32>}, {transform_indices = @transform_2, window_bounds = array<i64: 1, 96>}, {transform_indices = @transform_3, window_bounds = array<i64: 16, 96>}]} {
    %c0_i32 = arith.constant 0 : i32
    %0 = arith.cmpi eq, %arg2, %c0_i32 : i32
    %1 = arith.extui %0 : i1 to i32
    %c0_i32_0 = arith.constant 0 : i32
    %2 = arith.cmpi ne, %1, %c0_i32_0 : i32
    scf.if %2 {
      %c0_8 = arith.constant 0 : index
      %c0_9 = arith.constant 0 : index
      %9 = vector.load %arg5[%c0_8, %c0_9] : memref<1x96xf32, #tpu.memory_space<vmem>>, vector<1x96xf32>
      %10 = vector.shape_cast %9 : vector<1x96xf32> to vector<1x96xf32>
      %11 = vector.broadcast %10 : vector<1x96xf32> to vector<16x96xf32>
      %c0_10 = arith.constant 0 : index
      %c0_11 = arith.constant 0 : index
      %12 = vector.load %arg6[%c0_10, %c0_11] : memref<16x96xf32, #tpu.memory_space<vmem>>, vector<16x96xf32>
      tpu.vector_store %arg6[%c0_10, %c0_11], %11 {strides = array<i32>} : memref<16x96xf32, #tpu.memory_space<vmem>>, vector<16x96xf32>,
    } else {
    }
    %c0 = arith.constant 0 : index
    %c0_1 = arith.constant 0 : index
    %3 = vector.load %arg6[%c0, %c0_1] : memref<16x96xf32, #tpu.memory_space<vmem>>, vector<16x96xf32>
    %c0_2 = arith.constant 0 : index
    %c0_3 = arith.constant 0 : index
    %4 = vector.load %arg3[%c0_2, %c0_3] : memref<16x32xf32, #tpu.memory_space<vmem>>, vector<16x32xf32>
    %c0_4 = arith.constant 0 : index
    %c0_5 = arith.constant 0 : index
    %5 = vector.load %arg4[%c0_4, %c0_5] : memref<96x32xf32, #tpu.memory_space<vmem>>, vector<96x32xf32>
    %cst = arith.constant dense<0.000000e+00> : vector<16x96xf32>
    %6 = tpu.matmul %4, %5, %cst {dimension_numbers = #tpu.dot_dimension_numbers<[1], [1], [0], [0], [0, 0, 1, 0], [], []>} : vector<16x32xf32>, vector<96x32xf32>, vector<16x96xf32> -> vector<16x96xf32>
    %7 = arith.addf %3, %6 : vector<16x96xf32>
    %c0_6 = arith.constant 0 : index
    %c0_7 = arith.constant 0 : index
    %8 = vector.load %arg6[%c0_6, %c0_7] : memref<16x96xf32, #tpu.memory_space<vmem>>, vector<16x96xf32>
    tpu.vector_store %arg6[%c0_6, %c0_7], %7 {strides = array<i32>} : memref<16x96xf32, #tpu.memory_space<vmem>>, vector<16x96xf32>,
    return
  }
  func.func @transform_0(%arg0: i32, %arg1: i32, %arg2: i32) -> (i32, i32) {
    %c0_i32 = arith.constant 0 : i32
    return %arg0, %arg2 : i32, i32
  }
  func.func @transform_1(%arg0: i32, %arg1: i32, %arg2: i32) -> (i32, i32) {
    %c0_i32 = arith.constant 0 : i32
    return %arg1, %arg2 : i32, i32
  }
  func.func @transform_2(%arg0: i32, %arg1: i32, %arg2: i32) -> (i32, i32) {
    %c0_i32 = arith.constant 0 : i32
    %c0_i32_0 = arith.constant 0 : i32
    return %c0_i32, %arg1 : i32, i32
  }
  func.func @transform_3(%arg0: i32, %arg1: i32, %arg2: i32) -> (i32, i32) {
    %c0_i32 = arith.constant 0 : i32
    return %arg0, %arg1 : i32, i32
  }
}

module attributes {stable_mosaic.version = 11 : i64} {
  func.func @_flash_attn_kernel(%arg0: i32, %arg1: i32, %arg2: i32, %arg3: i32, %arg4: memref<1x1x8x8xf32, #tpu.memory_space<vmem>>, %arg5: memref<1x1x8x8xf32, #tpu.memory_space<vmem>>, %arg6: memref<1x1x8x8xf32, #tpu.memory_space<vmem>>, %arg7: memref<1x1x8x8xf32, #tpu.memory_space<vmem>>, %arg8: memref<8x1xf32, #tpu.memory_space<vmem>>, %arg9: memref<8x1xf32, #tpu.memory_space<vmem>>, %arg10: memref<8x8xf32, #tpu.memory_space<vmem>>) attributes {dimension_semantics = [#tpu.dimension_semantics<parallel>, #tpu.dimension_semantics<parallel>, #tpu.dimension_semantics<parallel>, #tpu.dimension_semantics<arbitrary>], iteration_bounds = array<i64: 2, 4, 1, 1>, scalar_prefetch = 0 : i64, scratch_operands = 3 : i64, tpu.core_type = #tpu.core_type<tc>, window_params = [{transform_indices = @transform_0, window_bounds = array<i64: 1, 1, 8, 8>}, {transform_indices = @transform_1, window_bounds = array<i64: 1, 1, 8, 8>}, {transform_indices = @transform_2, window_bounds = array<i64: 1, 1, 8, 8>}, {transform_indices = @transform_3, window_bounds = array<i64: 1, 1, 8, 8>}]} {
    %c0_i32 = arith.constant 0 : i32
    %0 = arith.cmpi eq, %arg3, %c0_i32 : i32
    %1 = arith.extui %0 : i1 to i32
    %c0_i32_0 = arith.constant 0 : i32
    %2 = arith.cmpi ne, %1, %c0_i32_0 : i32
    scf.if %2 {
      %cst = arith.constant 0xFF800000 : f32
      %12 = vector.broadcast %cst : f32 to vector<8x1xf32>
      %c0 = arith.constant 0 : index
      %c0_5 = arith.constant 0 : index
      %13 = vector.load %arg8[%c0, %c0_5] : memref<8x1xf32, #tpu.memory_space<vmem>>, vector<8x1xf32>
      tpu.vector_store %arg8[%c0, %c0_5], %12 {strides = array<i32>} : memref<8x1xf32, #tpu.memory_space<vmem>>, vector<8x1xf32>,
      %cst_6 = arith.constant 0.000000e+00 : f32
      %14 = vector.broadcast %cst_6 : f32 to vector<8x1xf32>
      %c0_7 = arith.constant 0 : index
      %c0_8 = arith.constant 0 : index
      %15 = vector.load %arg9[%c0_7, %c0_8] : memref<8x1xf32, #tpu.memory_space<vmem>>, vector<8x1xf32>
      tpu.vector_store %arg9[%c0_7, %c0_8], %14 {strides = array<i32>} : memref<8x1xf32, #tpu.memory_space<vmem>>, vector<8x1xf32>,
      %cst_9 = arith.constant 0.000000e+00 : f32
      %16 = vector.broadcast %cst_9 : f32 to vector<8x8xf32>
      %c0_10 = arith.constant 0 : index
      %c0_11 = arith.constant 0 : index
      %17 = vector.load %arg10[%c0_10, %c0_11] : memref<8x8xf32, #tpu.memory_space<vmem>>, vector<8x8xf32>
      tpu.vector_store %arg10[%c0_10, %c0_11], %16 {strides = array<i32>} : memref<8x8xf32, #tpu.memory_space<vmem>>, vector<8x8xf32>,
    } else {
    }
    %3 = arith.cmpi slt, %arg3, %arg2 : i32
    %4 = arith.extui %3 : i1 to i32
    %c0_i32_1 = arith.constant 0 : i32
    %5 = arith.cmpi ne, %4, %c0_i32_1 : i32
    scf.if %5 {
      %c0 = arith.constant 0 : index
      %c0_5 = arith.constant 0 : index
      %c0_6 = arith.constant 0 : index
      %c0_7 = arith.constant 0 : index
      %12 = vector.load %arg4[%c0, %c0_5, %c0_6, %c0_7] : memref<1x1x8x8xf32, #tpu.memory_space<vmem>>, vector<1x1x8x8xf32>
      %13 = vector.shape_cast %12 : vector<1x1x8x8xf32> to vector<8x8xf32>
      %cst = arith.constant 0.353553385 : f32
      %14 = vector.broadcast %cst : f32 to vector<8x8xf32>
      %15 = arith.mulf %13, %14 : vector<8x8xf32>
      %c0_8 = arith.constant 0 : index
      %c0_9 = arith.constant 0 : index
      %c0_10 = arith.constant 0 : index
      %c0_11 = arith.constant 0 : index
      %16 = vector.load %arg5[%c0_8, %c0_9, %c0_10, %c0_11] : memref<1x1x8x8xf32, #tpu.memory_space<vmem>>, vector<1x1x8x8xf32>
      %17 = vector.shape_cast %16 : vector<1x1x8x8xf32> to vector<8x8xf32>
      %c0_12 = arith.constant 0 : index
      %c0_13 = arith.constant 0 : index
      %c0_14 = arith.constant 0 : index
      %c0_15 = arith.constant 0 : index
      %18 = vector.load %arg6[%c0_12, %c0_13, %c0_14, %c0_15] : memref<1x1x8x8xf32, #tpu.memory_space<vmem>>, vector<1x1x8x8xf32>
      %19 = vector.shape_cast %18 : vector<1x1x8x8xf32> to vector<8x8xf32>
      %cst_16 = arith.constant dense<0.000000e+00> : vector<8x8xf32>
      %20 = tpu.matmul %15, %17, %cst_16 {dimension_numbers = #tpu.dot_dimension_numbers<[1], [1], [0], [0], [0, 0, 1, 0], [], []>} : vector<8x8xf32>, vector<8x8xf32>, vector<8x8xf32> -> vector<8x8xf32>
      %c0_17 = arith.constant 0 : index
      %c0_18 = arith.constant 0 : index
      %21 = vector.load %arg8[%c0_17, %c0_18] : memref<8x1xf32, #tpu.memory_space<vmem>>, vector<8x1xf32>
      %cst_19 = arith.constant dense<0xFF800000> : vector<8xf32>
      %22 = vector.multi_reduction <maximumf>, %20, %cst_19 [1] : vector<8x8xf32> to vector<8xf32>
      %23 = vector.shape_cast %22 : vector<8xf32> to vector<8x1xf32>
      %24 = arith.maximumf %21, %23 : vector<8x1xf32>
      %25 = arith.subf %21, %24 : vector<8x1xf32>
      %26 = math.exp %25 : vector<8x1xf32>
      %27 = vector.broadcast %24 : vector<8x1xf32> to vector<8x8xf32>
      %28 = arith.subf %20, %27 : vector<8x8xf32>
      %29 = math.exp %28 : vector<8x8xf32>
      %c0_20 = arith.constant 0 : index
      %c0_21 = arith.constant 0 : index
      %30 = vector.load %arg9[%c0_20, %c0_21] : memref<8x1xf32, #tpu.memory_space<vmem>>, vector<8x1xf32>
      %31 = arith.mulf %26, %30 : vector<8x1xf32>
      %cst_22 = arith.constant dense<0.000000e+00> : vector<8xf32>
      %32 = vector.multi_reduction <add>, %29, %cst_22 [1] : vector<8x8xf32> to vector<8xf32>
      %33 = vector.shape_cast %32 : vector<8xf32> to vector<8x1xf32>
      %34 = arith.addf %31, %33 : vector<8x1xf32>
      %c0_23 = arith.constant 0 : index
      %c0_24 = arith.constant 0 : index
      %35 = vector.load %arg9[%c0_23, %c0_24] : memref<8x1xf32, #tpu.memory_space<vmem>>, vector<8x1xf32>
      tpu.vector_store %arg9[%c0_23, %c0_24], %34 {strides = array<i32>} : memref<8x1xf32, #tpu.memory_space<vmem>>, vector<8x1xf32>,
      %cst_25 = arith.constant dense<0.000000e+00> : vector<8x8xf32>
      %36 = tpu.matmul %29, %19, %cst_25 {dimension_numbers = #tpu.dot_dimension_numbers<[1], [0], [0], [1], [0, 0, 1, 1], [], []>} : vector<8x8xf32>, vector<8x8xf32>, vector<8x8xf32> -> vector<8x8xf32>
      %c0_26 = arith.constant 0 : index
      %c0_27 = arith.constant 0 : index
      %37 = vector.load %arg10[%c0_26, %c0_27] : memref<8x8xf32, #tpu.memory_space<vmem>>, vector<8x8xf32>
      %38 = vector.broadcast %26 : vector<8x1xf32> to vector<8x8xf32>
      %39 = arith.mulf %38, %37 : vector<8x8xf32>
      %40 = arith.addf %39, %36 : vector<8x8xf32>
      %c0_28 = arith.constant 0 : index
      %c0_29 = arith.constant 0 : index
      %41 = vector.load %arg10[%c0_28, %c0_29] : memref<8x8xf32, #tpu.memory_space<vmem>>, vector<8x8xf32>
      tpu.vector_store %arg10[%c0_28, %c0_29], %40 {strides = array<i32>} : memref<8x8xf32, #tpu.memory_space<vmem>>, vector<8x8xf32>,
      %c0_30 = arith.constant 0 : index
      %c0_31 = arith.constant 0 : index
      %42 = vector.load %arg8[%c0_30, %c0_31] : memref<8x1xf32, #tpu.memory_space<vmem>>, vector<8x1xf32>
      tpu.vector_store %arg8[%c0_30, %c0_31], %24 {strides = array<i32>} : memref<8x1xf32, #tpu.memory_space<vmem>>, vector<8x1xf32>,
    } else {
    }
    %6 = arith.cmpi eq, %arg3, %arg2 : i32
    %7 = arith.extui %6 : i1 to i32
    %c0_i32_2 = arith.constant 0 : i32
    %8 = arith.cmpi ne, %7, %c0_i32_2 : i32
    scf.if %8 {
      %c0 = arith.constant 0 : index
      %c0_5 = arith.constant 0 : index
      %c0_6 = arith.constant 0 : index
      %c0_7 = arith.constant 0 : index
      %12 = vector.load %arg4[%c0, %c0_5, %c0_6, %c0_7] : memref<1x1x8x8xf32, #tpu.memory_space<vmem>>, vector<1x1x8x8xf32>
      %13 = vector.shape_cast %12 : vector<1x1x8x8xf32> to vector<8x8xf32>
      %cst = arith.constant 0.353553385 : f32
      %14 = vector.broadcast %cst : f32 to vector<8x8xf32>
      %15 = arith.mulf %13, %14 : vector<8x8xf32>
      %c0_8 = arith.constant 0 : index
      %c0_9 = arith.constant 0 : index
      %c0_10 = arith.constant 0 : index
      %c0_11 = arith.constant 0 : index
      %16 = vector.load %arg5[%c0_8, %c0_9, %c0_10, %c0_11] : memref<1x1x8x8xf32, #tpu.memory_space<vmem>>, vector<1x1x8x8xf32>
      %17 = vector.shape_cast %16 : vector<1x1x8x8xf32> to vector<8x8xf32>
      %c0_12 = arith.constant 0 : index
      %c0_13 = arith.constant 0 : index
      %c0_14 = arith.constant 0 : index
      %c0_15 = arith.constant 0 : index
      %18 = vector.load %arg6[%c0_12, %c0_13, %c0_14, %c0_15] : memref<1x1x8x8xf32, #tpu.memory_space<vmem>>, vector<1x1x8x8xf32>
      %19 = vector.shape_cast %18 : vector<1x1x8x8xf32> to vector<8x8xf32>
      %cst_16 = arith.constant dense<0.000000e+00> : vector<8x8xf32>
      %20 = tpu.matmul %15, %17, %cst_16 {dimension_numbers = #tpu.dot_dimension_numbers<[1], [1], [0], [0], [0, 0, 1, 0], [], []>} : vector<8x8xf32>, vector<8x8xf32>, vector<8x8xf32> -> vector<8x8xf32>
      %c8_i32 = arith.constant 8 : i32
      %21 = arith.muli %arg2, %c8_i32 : i32
      %22 = tpu.iota {dimensions = array<i32: 0>} : vector<8x8xi32>
      %23 = vector.broadcast %21 : i32 to vector<8x8xi32>
      %24 = arith.addi %23, %22 : vector<8x8xi32>
      %c8_i32_17 = arith.constant 8 : i32
      %25 = arith.muli %arg3, %c8_i32_17 : i32
      %26 = tpu.iota {dimensions = array<i32: 1>} : vector<8x8xi32>
      %27 = vector.broadcast %25 : i32 to vector<8x8xi32>
      %28 = arith.addi %27, %26 : vector<8x8xi32>
      %29 = arith.cmpi sle, %28, %24 : vector<8x8xi32>
      %cst_18 = arith.constant 0xFF800000 : f32
      %30 = vector.broadcast %cst_18 : f32 to vector<8x8xf32>
      %31 = arith.select %29, %20, %30 : vector<8x8xi1>, vector<8x8xf32>
      %c0_19 = arith.constant 0 : index
      %c0_20 = arith.constant 0 : index
      %32 = vector.load %arg8[%c0_19, %c0_20] : memref<8x1xf32, #tpu.memory_space<vmem>>, vector<8x1xf32>
      %cst_21 = arith.constant dense<0xFF800000> : vector<8xf32>
      %33 = vector.multi_reduction <maximumf>, %31, %cst_21 [1] : vector<8x8xf32> to vector<8xf32>
      %34 = vector.shape_cast %33 : vector<8xf32> to vector<8x1xf32>
      %35 = arith.maximumf %32, %34 : vector<8x1xf32>
      %36 = arith.subf %32, %35 : vector<8x1xf32>
      %37 = math.exp %36 : vector<8x1xf32>
      %38 = vector.broadcast %35 : vector<8x1xf32> to vector<8x8xf32>
      %39 = arith.subf %31, %38 : vector<8x8xf32>
      %40 = math.exp %39 : vector<8x8xf32>
      %c0_22 = arith.constant 0 : index
      %c0_23 = arith.constant 0 : index
      %41 = vector.load %arg9[%c0_22, %c0_23] : memref<8x1xf32, #tpu.memory_space<vmem>>, vector<8x1xf32>
      %42 = arith.mulf %37, %41 : vector<8x1xf32>
      %cst_24 = arith.constant dense<0.000000e+00> : vector<8xf32>
      %43 = vector.multi_reduction <add>, %40, %cst_24 [1] : vector<8x8xf32> to vector<8xf32>
      %44 = vector.shape_cast %43 : vector<8xf32> to vector<8x1xf32>
      %45 = arith.addf %42, %44 : vector<8x1xf32>
      %c0_25 = arith.constant 0 : index
      %c0_26 = arith.constant 0 : index
      %46 = vector.load %arg9[%c0_25, %c0_26] : memref<8x1xf32, #tpu.memory_space<vmem>>, vector<8x1xf32>
      tpu.vector_store %arg9[%c0_25, %c0_26], %45 {strides = array<i32>} : memref<8x1xf32, #tpu.memory_space<vmem>>, vector<8x1xf32>,
      %cst_27 = arith.constant dense<0.000000e+00> : vector<8x8xf32>
      %47 = tpu.matmul %40, %19, %cst_27 {dimension_numbers = #tpu.dot_dimension_numbers<[1], [0], [0], [1], [0, 0, 1, 1], [], []>} : vector<8x8xf32>, vector<8x8xf32>, vector<8x8xf32> -> vector<8x8xf32>
      %c0_28 = arith.constant 0 : index
      %c0_29 = arith.constant 0 : index
      %48 = vector.load %arg10[%c0_28, %c0_29] : memref<8x8xf32, #tpu.memory_space<vmem>>, vector<8x8xf32>
      %49 = vector.broadcast %37 : vector<8x1xf32> to vector<8x8xf32>
      %50 = arith.mulf %49, %48 : vector<8x8xf32>
      %51 = arith.addf %50, %47 : vector<8x8xf32>
      %c0_30 = arith.constant 0 : index
      %c0_31 = arith.constant 0 : index
      %52 = vector.load %arg10[%c0_30, %c0_31] : memref<8x8xf32, #tpu.memory_space<vmem>>, vector<8x8xf32>
      tpu.vector_store %arg10[%c0_30, %c0_31], %51 {strides = array<i32>} : memref<8x8xf32, #tpu.memory_space<vmem>>, vector<8x8xf32>,
      %c0_32 = arith.constant 0 : index
      %c0_33 = arith.constant 0 : index
      %53 = vector.load %arg8[%c0_32, %c0_33] : memref<8x1xf32, #tpu.memory_space<vmem>>, vector<8x1xf32>
      tpu.vector_store %arg8[%c0_32, %c0_33], %35 {strides = array<i32>} : memref<8x1xf32, #tpu.memory_space<vmem>>, vector<8x1xf32>,
    } else {
    }
    %c0_i32_3 = arith.constant 0 : i32
    %9 = arith.cmpi eq, %arg3, %c0_i32_3 : i32
    %10 = arith.extui %9 : i1 to i32
    %c0_i32_4 = arith.constant 0 : i32
    %11 = arith.cmpi ne, %10, %c0_i32_4 : i32
    scf.if %11 {
      %c0 = arith.constant 0 : index
      %c0_5 = arith.constant 0 : index
      %12 = vector.load %arg10[%c0, %c0_5] : memref<8x8xf32, #tpu.memory_space<vmem>>, vector<8x8xf32>
      %c0_6 = arith.constant 0 : index
      %c0_7 = arith.constant 0 : index
      %13 = vector.load %arg9[%c0_6, %c0_7] : memref<8x1xf32, #tpu.memory_space<vmem>>, vector<8x1xf32>
      %14 = vector.broadcast %13 : vector<8x1xf32> to vector<8x8xf32>
      %15 = arith.divf %12, %14 : vector<8x8xf32>
      %c0_8 = arith.constant 0 : index
      %c0_9 = arith.constant 0 : index
      %c0_10 = arith.constant 0 : index
      %c0_11 = arith.constant 0 : index
      %16 = vector.load %arg7[%c0_8, %c0_9, %c0_10, %c0_11] : memref<1x1x8x8xf32, #tpu.memory_space<vmem>>, vector<1x1x8x8xf32>
      %17 = vector.shape_cast %16 : vector<1x1x8x8xf32> to vector<8x8xf32>
      %18 = vector.shape_cast %15 : vector<8x8xf32> to vector<1x1x8x8xf32>
      tpu.vector_store %arg7[%c0_8, %c0_9, %c0_10, %c0_11], %18 {strides = array<i32>} : memref<1x1x8x8xf32, #tpu.memory_space<vmem>>, vector<1x1x8x8xf32>,
    } else {
    }
    return
  }
  func.func @transform_0(%arg0: i32, %arg1: i32, %arg2: i32, %arg3: i32) -> (i32, i32, i32, i32) {
    %c0_i32 = arith.constant 0 : i32
    %c0_i32_0 = arith.constant 0 : i32
    return %arg0, %arg1, %arg2, %c0_i32 : i32, i32, i32, i32
  }
  func.func @transform_1(%arg0: i32, %arg1: i32, %arg2: i32, %arg3: i32) -> (i32, i32, i32, i32) {
    %0 = arith.minsi %arg3, %arg2 : i32
    %c0_i32 = arith.constant 0 : i32
    %c0_i32_0 = arith.constant 0 : i32
    return %arg0, %arg1, %0, %c0_i32 : i32, i32, i32, i32
  }
  func.func @transform_2(%arg0: i32, %arg1: i32, %arg2: i32, %arg3: i32) -> (i32, i32, i32, i32) {
    %0 = arith.minsi %arg3, %arg2 : i32
    %c0_i32 = arith.constant 0 : i32
    %c0_i32_0 = arith.constant 0 : i32
    return %arg0, %arg1, %0, %c0_i32 : i32, i32, i32, i32
  }
  func.func @transform_3(%arg0: i32, %arg1: i32, %arg2: i32, %arg3: i32) -> (i32, i32, i32, i32) {
    %c0_i32 = arith.constant 0 : i32
    %c0_i32_0 = arith.constant 0 : i32
    return %arg0, %arg1, %arg2, %c0_i32 : i32, i32, i32, i32
  }
}

module attributes {stable_mosaic.version = 11 : i64} {
  func.func @_linear_kernel_f32out(%arg0: i32, %arg1: i32, %arg2: i32, %arg3: memref<16x32xf32, #tpu.memory_space<vmem>>, %arg4: memref<32x32xf32, #tpu.memory_space<vmem>>, %arg5: memref<1x32xf32, #tpu.memory_space<vmem>>, %arg6: memref<16x32xf32, #tpu.memory_space<vmem>>) attributes {dimension_semantics = [#tpu.dimension_semantics<parallel>, #tpu.dimension_semantics<parallel>, #tpu.dimension_semantics<arbitrary>], iteration_bounds = array<i64: 1, 1, 1>, scalar_prefetch = 0 : i64, scratch_operands = 0 : i64, tpu.core_type = #tpu.core_type<tc>, window_params = [{transform_indices = @transform_0, window_bounds = array<i64: 16, 32>}, {transform_indices = @transform_1, window_bounds = array<i64: 32, 32>}, {transform_indices = @transform_2, window_bounds = array<i64: 1, 32>}, {transform_indices = @transform_3, window_bounds = array<i64: 16, 32>}]} {
    %c0_i32 = arith.constant 0 : i32
    %0 = arith.cmpi eq, %arg2, %c0_i32 : i32
    %1 = arith.extui %0 : i1 to i32
    %c0_i32_0 = arith.constant 0 : i32
    %2 = arith.cmpi ne, %1, %c0_i32_0 : i32
    scf.if %2 {
      %c0_8 = arith.constant 0 : index
      %c0_9 = arith.constant 0 : index
      %9 = vector.load %arg5[%c0_8, %c0_9] : memref<1x32xf32, #tpu.memory_space<vmem>>, vector<1x32xf32>
      %10 = vector.shape_cast %9 : vector<1x32xf32> to vector<1x32xf32>
      %11 = vector.broadcast %10 : vector<1x32xf32> to vector<16x32xf32>
      %c0_10 = arith.constant 0 : index
      %c0_11 = arith.constant 0 : index
      %12 = vector.load %arg6[%c0_10, %c0_11] : memref<16x32xf32, #tpu.memory_space<vmem>>, vector<16x32xf32>
      tpu.vector_store %arg6[%c0_10, %c0_11], %11 {strides = array<i32>} : memref<16x32xf32, #tpu.memory_space<vmem>>, vector<16x32xf32>,
    } else {
    }
    %c0 = arith.constant 0 : index
    %c0_1 = arith.constant 0 : index
    %3 = vector.load %arg6[%c0, %c0_1] : memref<16x32xf32, #tpu.memory_space<vmem>>, vector<16x32xf32>
    %c0_2 = arith.constant 0 : index
    %c0_3 = arith.constant 0 : index
    %4 = vector.load %arg3[%c0_2, %c0_3] : memref<16x32xf32, #tpu.memory_space<vmem>>, vector<16x32xf32>
    %c0_4 = arith.constant 0 : index
    %c0_5 = arith.constant 0 : index
    %5 = vector.load %arg4[%c0_4, %c0_5] : memref<32x32xf32, #tpu.memory_space<vmem>>, vector<32x32xf32>
    %cst = arith.constant dense<0.000000e+00> : vector<16x32xf32>
    %6 = tpu.matmul %4, %5, %cst {dimension_numbers = #tpu.dot_dimension_numbers<[1], [1], [0], [0], [0, 0, 1, 0], [], []>} : vector<16x32xf32>, vector<32x32xf32>, vector<16x32xf32> -> vector<16x32xf32>
    %7 = arith.addf %3, %6 : vector<16x32xf32>
    %c0_6 = arith.constant 0 : index
    %c0_7 = arith.constant 0 : index
    %8 = vector.load %arg6[%c0_6, %c0_7] : memref<16x32xf32, #tpu.memory_space<vmem>>, vector<16x32xf32>
    tpu.vector_store %arg6[%c0_6, %c0_7], %7 {strides = array<i32>} : memref<16x32xf32, #tpu.memory_space<vmem>>, vector<16x32xf32>,
    return
  }
  func.func @transform_0(%arg0: i32, %arg1: i32, %arg2: i32) -> (i32, i32) {
    %c0_i32 = arith.constant 0 : i32
    return %arg0, %arg2 : i32, i32
  }
  func.func @transform_1(%arg0: i32, %arg1: i32, %arg2: i32) -> (i32, i32) {
    %c0_i32 = arith.constant 0 : i32
    return %arg1, %arg2 : i32, i32
  }
  func.func @transform_2(%arg0: i32, %arg1: i32, %arg2: i32) -> (i32, i32) {
    %c0_i32 = arith.constant 0 : i32
    %c0_i32_0 = arith.constant 0 : i32
    return %c0_i32, %arg1 : i32, i32
  }
  func.func @transform_3(%arg0: i32, %arg1: i32, %arg2: i32) -> (i32, i32) {
    %c0_i32 = arith.constant 0 : i32
    return %arg0, %arg1 : i32, i32
  }
}

</mosaic_0001>

<bundles_post_ra>
// kernel: causal_self_attention.3
= control target key start
LH: loop header
LB: loop body
LE: loop exit
PB: predicated region body
PF: predicated region fallthrough
CT: control target
= control target key end

     0   :  { %vm44_vm0 = vcmask 261120   ;;  %vm25_vm2 = vcmask 785408   ;;  %s382_s1 = inlined_call_operand.vmem [shape: f32[96,32], index: 1, kind: input, shape index: {}]   ;;  %s383_s0 = inlined_call_operand.vmem [shape: f32[16,32], index: 0, kind: input, shape index: {}]   ;;  %s384_s2 = inlined_call_operand.vmem [shape: f32[1,96], index: 2, kind: input, shape index: {}]   ;;  %s385_s3 = inlined_call_operand.vmem [shape: f32[16,96], index: 3, kind: output, shape index: {}]  }
   0x1   :  { %v32_v0 = vld [vmem:[%s382_s1] sm:$0xff]  ;;  %v33_v1 = vld [vmem:[%s382_s1 + $0x8] sm:$0xff]  ;;  %vm291_vm1 = vmpackc.low %vm44_vm0, %vm44_vm0 }
   0x2   :  { %v227_v3 = vpack.c.bf16 %v33_v1, %v32_v0  ;;  %v34_v4 = vld [vmem:[%s382_s1 + $0x10] sm:$0xff]  ;;  %v35_v5 = vld [vmem:[%s382_s1 + $0x18] sm:$0xff]  ;;  %v30_v7 = vld [vmem:[%s383_s0] sm:$0xff] }
   0x3   :  { %v233_v6 = vpack.c.bf16 %v35_v5, %v34_v4  ;;  %224 = vmatprep.mubr.msk.f32.mxu0 %vm44_vm0, %v30_v7  ;;  %v171_v8 = vld [vmem:[%s384_s2] ss:$0 sm:$0xff]  ;;  %v37_v10 = vld [vmem:[%s382_s1 + $0x28] sm:$0xff]  ;;  %v38_v12 = vld [vmem:[%s382_s1 + $0x30] sm:$0xff] }
   0x4   :  { %229 = vmatprep.subr.msk.bf16.mxu0 %vm291_vm1, %v227_v3  ;;  %v36_v9 = vld [vmem:[%s382_s1 + $0x20] sm:$0xff]  ;;  %27 = vst.msk [vmem:[%s385_s3 + $0x8] sm:$0xff] %vm25_vm2, %v171_v8  ;;  %26 = vst.msk [vmem:[%s385_s3] sm:$0xff] %vm25_vm2, %v171_v8  ;;  %v39_v13 = vld [vmem:[%s382_s1 + $0x38] sm:$0xff] }
   0x5   :  { %232 = vmatpush3.bf16.xpose.msk.msra.mxu0 %vm291_vm1, %v227_v3  ;;  %v239_v11 = vpack.c.bf16 %v37_v10, %v36_v9  ;;  %v245_v14 = vpack.c.bf16 %v39_v13, %v38_v12  ;;  %v40_v15 = vld [vmem:[%s382_s1 + $0x40] sm:$0xff]  ;;  %v41_v16 = vld [vmem:[%s382_s1 + $0x48] sm:$0xff]  ;;  %v42_v18 = vld [vmem:[%s382_s1 + $0x50] sm:$0xff] }
   0x6   :  { %235 = vmatprep.subr.msk.bf16.mxu0 %vm291_vm1, %v233_v6  ;;  %v251_v17 = vpack.c.bf16 %v41_v16, %v40_v15  ;;  %v43_v19 = vld [vmem:[%s382_s1 + $0x58] sm:$0xff]  ;;  %v31_v21 = vld [vmem:[%s383_s0 + $0x8] sm:$0xff] }
   0x7   :  { %v257_v20 = vpack.c.bf16 %v43_v19, %v42_v18 }
   0xb   :  { %v29_v22 = vld [vmem:[%s385_s3 + $0x8] sm:$0xff]  ;;  %v28_v23 = vld [vmem:[%s385_s3] sm:$0xff] }
   0xd   :  { %238 = vmatpush3.bf16.xpose.msk.msra.mxu0 %vm291_vm1, %v233_v6 }
   0xe   :  { %241 = vmatprep.subr.msk.bf16.mxu0 %vm291_vm1, %v239_v11 }
  0x15   :  { %244 = vmatpush3.bf16.xpose.msk.msra.mxu0 %vm291_vm1, %v239_v11 }
  0x16   :  { %247 = vmatprep.subr.msk.bf16.mxu0 %vm291_vm1, %v245_v14 }
  0x1d   :  { %250 = vmatpush3.bf16.xpose.msk.msra.mxu0 %vm291_vm1, %v245_v14 }
  0x1e   :  { %253 = vmatprep.subr.msk.bf16.mxu0 %vm291_vm1, %v251_v17 }
  0x25   :  { %256 = vmatpush3.bf16.xpose.msk.msra.mxu0 %vm291_vm1, %v251_v17 }
  0x26   :  { %259 = vmatprep.subr.msk.bf16.mxu0 %vm291_vm1, %v257_v20 }
  0x2d   :  { %262 = vmatpush3.bf16.xpose.msk.msra.mxu0 %vm291_vm1, %v257_v20 }
  0x34   :  { %225 = vmatmul.mubr.msk.f32.vlgmr.msra.gmra.mrb[0].mxu0 %vm44_vm0, %v31_v21 }
 0x107   :  { %v226_v24 = vpop.f32.mrb[0].mxu0 }
 0x108   :  { %v163_v25 = vadd.f32 %v226_v24, %v29_v22  ;;  %v153_v26 = vpop.f32.mrb[1].mxu0 }
 0x109   :  { %v162_v27 = vadd.f32 %v153_v26, %v28_v23 }
 0x10a   :  { %166 = vst.msk [vmem:[%s385_s3 + $0x8] sm:$0xff] %vm25_vm2, %v163_v25 }
 0x10b   :  { %165 = vst.msk [vmem:[%s385_s3] sm:$0xff] %vm25_vm2, %v162_v27 }

// kernel: causal_self_attention.5
= control target key start
LH: loop header
LB: loop body
LE: loop exit
PB: predicated region body
PF: predicated region fallthrough
CT: control target
= control target key end

     0   :  { %vm26_vm0 = vcmask 261120   ;;  %s278_s0 = inlined_call_operand.vmem [shape: f32[16,32], index: 0, kind: input, shape index: {}]   ;;  %s279_s1 = inlined_call_operand.vmem [shape: f32[32,32], index: 1, kind: input, shape index: {}]   ;;  %s280_s2 = inlined_call_operand.vmem [shape: f32[1,32], index: 2, kind: input, shape index: {}]   ;;  %s281_s3 = inlined_call_operand.hbm [shape: f32[16,32], index: 3, kind: output, shape index: {}]  }
   0x1   :  { %v33_v0 = vld [vmem:[%s279_s1] sm:$0xff]  ;;  %v34_v1 = vld [vmem:[%s279_s1 + $0x8] sm:$0xff]  ;;  %v35_v2 = vld [vmem:[%s279_s1 + $0x10] sm:$0xff] }
   0x2   :  { %v175_v3 = vpack.c.bf16 %v34_v1, %v33_v0  ;;  %vm176_vm1 = vmpackc.low %vm26_vm0, %vm26_vm0  ;;  %v36_v4 = vld [vmem:[%s279_s1 + $0x18] sm:$0xff]  ;;  %v31_v5 = vld [vmem:[%s278_s0] sm:$0xff] }
   0x3   :  { %v181_v6 = vpack.c.bf16 %v36_v4, %v35_v2  ;;  %172 = vmatprep.mubr.msk.f32.mxu0 %vm26_vm0, %v31_v5  ;;  %v151_v7 = vld [vmem:[%s280_s2] ss:$0 sm:$0xff] }
   0x4   :  { %8 = vsyncpa [#allocation3], 0  ;;  %177 = vmatprep.subr.msk.bf16.mxu0 %vm176_vm1, %v175_v3  ;;  %28 = vst.msk [vmem:[#allocation2 + $0x8] sm:$0xff] %vm26_vm0, %v151_v7  ;;  %v32_v8 = vld [vmem:[%s278_s0 + $0x8] sm:$0xff]  ;;  %s214_s25 = smov [#allocation2]  }
   0x5   :  { %27 = vst.msk [vmem:[#allocation2] sm:$0xff] %vm26_vm0, %v151_v7  ;;  %180 = vmatpush3.bf16.xpose.msk.msra.mxu0 %vm176_vm1, %v175_v3  ;;  %s140_s26 = sshll.u32 %s214_s25, 4  ;;  %s141_s26 = int_to_ptr.vmem [resolvable:$true] %s140_s26 }
   0x6   :  { %183 = vmatprep.subr.msk.bf16.mxu0 %vm176_vm1, %v181_v6  ;;  %s190_s2 = scalar_lea.vmem %s141_s26, 256  ;;  %p195_p1 = scmp.lt.s32.totalorder %s141_s26, %s141_s26 }
   0x7   :  { %p191_p0 = scmp.ne.s32.totalorder %s141_s26, %s190_s2  ;;  %p196_p2 = scmp.lt.s32.totalorder %s190_s2, %s190_s2 }
   0x9   :  { %p197_p3 = por %p196_p2, %p195_p1 }
   0xb   :  { %v30_v9 = vld [vmem:[#allocation2 + $0x8] sm:$0xff]  ;;  %p198_p4 = pnand %p197_p3, %p191_p0 }
   0xc   :  { %v29_v10 = vld [vmem:[#allocation2] sm:$0xff] }
   0xd   :  { %186 = vmatpush3.bf16.xpose.msk.msra.mxu0 %vm176_vm1, %v181_v6 }
  0x14   :  { %173 = vmatmul.mubr.msk.f32.vlgmr.msra.gmra.mrb[0].mxu0 %vm26_vm0, %v32_v8 }
  0xe7   :  { %v174_v11 = vpop.f32.mrb[0].mxu0 }
  0xe8   :  { %v132_v12 = vadd.f32 %v174_v11, %v30_v9  ;;  %v122_v13 = vpop.f32.mrb[1].mxu0 }
  0xe9   :  { %v131_v14 = vadd.f32 %v122_v13, %v29_v10 }
  0xea   :  { %134 = vst.msk [vmem:[#allocation2 + $0x8] sm:$0xff] %vm26_vm0, %v132_v12 }
  0xeb   :  { %133 = vst.msk [vmem:[#allocation2] sm:$0xff] %vm26_vm0, %v131_v14 }
  0xec   :  { %201 = shalt.err (!%p198_p4)
}
  0xed   :  { %s202_s28 = scalar_lea.hbm %s281_s3, 256 }
  0xee   :  { %p203_p5 = scmp.ne.s32.totalorder %s281_s3, %s202_s28  ;;  %p206_p6 = scmp.lt.u32.totalorder %s202_s28, %s281_s3 }
  0xf0   :  { %p208_p7 = pnand %p206_p6, %p203_p5 }
  0xf2   :  { %211 = shalt.err (!%p208_p7)
}
  0xf3   :  { %s215_s6 = smov 128   ;;  %s216_s7 = smov 8  }
  0xf4   :  { %146 = dma.vmem_to_hbm [thread:$0]  %s141_s26, 256, %s281_s3, [#allocation3], %s215_s6, %s215_s6, %s216_s7  }
  0xf5   :  { %212 = dma.done.wait [#allocation3], 256  }
  0xf6   :  { %213 = vsyncadd [#allocation3], 4294967040 }
  0xf7   :  { %150 = vsyncpa [#allocation3], 1 }

// kernel: causal_self_attention.4
= control target key start
LH: loop header
LB: loop body
LE: loop exit
PB: predicated region body
PF: predicated region fallthrough
CT: control target
= control target key end

     0   :  { %s1064_s12 = smov 0   ;;  %s1066_s13 = smov 0   ;;  %s1139_s0 = inlined_call_operand.vmem [shape: f32[2,4,8,8], index: 0, kind: input, shape index: {}]   ;;  %s1140_s1 = inlined_call_operand.vmem [shape: f32[2,4,8,8], index: 1, kind: input, shape index: {}]   ;;  %s1141_s2 = inlined_call_operand.vmem [shape: f32[2,4,8,8], index: 2, kind: input, shape index: {}]   ;;  %s1142_s3 = inlined_call_operand.vmem [shape: f32[2,4,8,8], index: 3, kind: output, shape index: {}]  }
   0x1   :  { %s1068_s14 = smov 0   ;;  %s1070_s15 = smov 0  }
   0x2   :  { %s1072_s16 = smov 0  }
   0x3 LB: > { %s35_s17 = sadd.s32 1, %s1030_s14  ;;  %s39_s18 = sadd.s32 1, %s1034_s15  ;;  %s1038_s16 = sphi %s1072_s16, %s13_s16   ;;  %s1034_s15 = sphi %s1070_s15, %s1146_s15   ;;  %s1030_s14 = sphi %s1068_s14, %s1145_s14   ;;  %s1026_s13 = sphi %s1066_s13, %s1144_s13   ;;  %s1022_s12 = sphi %s1064_s12, %s1143_s12  }
   0x4   : > { %p37_p0 = scmp.ge.s32.totalorder %s35_s17, 4  ;;  %p917_p1 = scmp.ge.s32.totalorder %s1038_s16, 1 }
   0x5   : > { %p233_p2 = scmp.lt.s32.totalorder %s1038_s16, 9 }
   0x6   : > { %s1148_s17 = smov (%p37_p0, %s35_s17), 0  ;;  %s1150_s18 = smov (!%p37_p0, %s39_s18), %s1034_s15 }
   0x7   : > { %p234_p3 = pnand %p917_p1, %p233_p2  ;;  %p41_p4 = scmp.ge.s32.totalorder %s1150_s18, 2 }
   0x8   : > { %p295_p5 = scmp.lt.s32.totalorder (!%p234_p3), %s1026_s13, 1  ;;  %p297_p6 = scmp.lt.s32.totalorder (!%p234_p3), %s1022_s12, 3  ;;  %vm354_vm0 = vcmask (!%p234_p3), 64512   ;;  %v1040_v0 = vmov (!%p234_p3), 0.0   ;;  %vm1041_vm1 = vmmov (!%p234_p3), 0   ;;  %vm351_vm2 = vcmask (!%p234_p3), 7168  }
   0x9   : > { %s1152_s18 = smov (%p41_p4, %s1150_s18), 0  ;;  %237 = sbr.rel (%p234_p3) target bundleno = 821 (0x335), region = 32 }
   0xa   : > { %938 = vmatprep.subr.mxu0 (!%p234_p3), %v1040_v0  ;;  %355 = vst.msk [vmem:[#allocation4] sm:$0xff] (!%p234_p3), %vm354_vm0, %v1040_v0  ;;  %940 = vmatprep.mubr.msk.f32.mxu0 (!%p234_p3), %vm1041_vm1, %v1040_v0  ;;  %v1042_v4 = vmov (!%p234_p3), -inf   ;;  %v634_v5 = vlaneseq (!%p234_p3)  ;;  %v1043_v12 = vmov (!%p234_p3), 0  }
   0xb   : > { %943 = vmatprep.subr.mxu1 (!%p234_p3), %v1040_v0  ;;  %945 = vmatprep.mubr.msk.f32.mxu1 (!%p234_p3), %vm1041_vm1, %v1040_v0  ;;  %352 = vst.msk [vmem:[#allocation2] sm:$0xff] (!%p234_p3), %vm351_vm2, %v1042_v4  ;;  %353 = vst.msk [vmem:[#allocation3] sm:$0xff] (!%p234_p3), %vm351_vm2, %v1040_v0 }
   0xc   : > { %v635_v6 = vshrl.u32 (!%p234_p3), %v634_v5, 7  ;;  %v640_v7 = vand.u32 (!%p234_p3), 127, %v634_v5  ;;  %992 = vset.pattern.permute.xlu0 (!%p234_p3), %v1043_v12  ;;  %993 = vset.pattern.permute.xlu1 (!%p234_p3), %v1043_v12 }
   0xe   : > { %vm643_vm3 = vcmp.le.s32.totalorder (!%p234_p3), %v640_v7, %v635_v6 }
  0x10   : > { %s1154_s13 = smov (!%p295_p5, %s1026_s13), 1  ;;  %s1156_s12 = smov (!%p297_p6, %s1022_s12), 3 }
  0x11   : > { %s918_s19 = sshll.u32 %s1154_s13, 2  ;;  %v742_v30 = vld [vmem:[#allocation4] sm:$0xff] }
  0x12   : > { %s303_s20 = sadd.s32 %s918_s19, %s1156_s12  ;;  %v645_v13 = vld [vmem:[#allocation2] sm:$0xff]  ;;  %v661_v25 = vld [vmem:[#allocation3] sm:$0xff] }
  0x13   : > { %s1095_s21 = sshll.u32 %s303_s20, 3 }
  0x14   : > { %s318_s24 = scalar_lea.vmem %s1140_s1, %s1095_s21  ;;  %s305_s27 = scalar_lea.vmem %s1139_s0, %s1095_s21 }
  0x15   : > { %v554_v1 = vld [vmem:[%s318_s24] sm:$0xff]  ;;  %s333_s30 = scalar_lea.vmem %s1141_s2, %s1095_s21  ;;  %s346_s6 = scalar_lea.vmem %s1142_s3, %s1095_s21 }
  0x16   : > { %939 = vmatpush3.xpose.msk.msra.mxu0 %vm354_vm0, %v554_v1  ;;  %v552_v2 = vld [vmem:[%s305_s27] sm:$0xff] }
  0x17   : > { %v553_v3 = vmul.f32 0.35355338, %v552_v2  ;;  %v555_v17 = vld [vmem:[%s333_s30] sm:$0xff] }
  0x18   : > { %944 = vmatpush3.msra.mxu1 %v555_v17 }
  0x19   : > { %941 = vmatmul.mubr.msk.f32.vlgmr.msra.gmra.mrb[0].mxu0 %vm354_vm0, %v553_v3 }
  0xec   : > { %v629_v8 = vpop.f32.mrb[0].mxu0 }
  0xed   : > { %v644_v9 = vsel %vm643_vm3, %v629_v8, -inf  ;;  %v942_v10 = vpop.f32.mrb[1].mxu0 }
  0xee   : > { %v646_v11 = vsel %vm354_vm0, %v644_v9, -inf }
  0xef   : > { %647 = vmax.xlane.f32.xlu0 %v646_v11 }
 0x17c   : > { %v648_v14 = vpop.xlane.xlu0 %647 }
 0x17d   : > { %v649_v15 = vmax.f32 %v645_v13, %v648_v14 }
 0x17f   : > { %v650_v16 = vsub.f32 %v645_v13, %v649_v15  ;;  %751 = vst.msk [vmem:[#allocation2] sm:$0xff] %vm351_vm2, %v649_v15  ;;  %655 = vperm.xlu0 %992, %v649_v15  }
 0x181   : > { %v651_v23 = vmul.f32 1.442695, %v650_v16 }
 0x1fe   : > { %v656_v18 = vpop.permute.xlu0 %655 }
 0x1ff   : > { %v658_v19 = vsub.f32 %v644_v9, %v656_v18 }
 0x201   : > { %v659_v20 = vmul.f32 1.442695, %v658_v19 }
 0x203   : > { %994 = vpow2.f32 %v659_v20 }
 0x204   : > { %996 = vpow2.f32 %v651_v23 }
 0x20d   : > { %v995_v21 = vpop.eup %994 }
 0x20e   : > { %946 = vmatmul.mubr.msk.f32.vlgmr.msra.gmra.mrb[0].mxu1 %vm354_vm0, %v995_v21  ;;  %v663_v22 = vsel %vm354_vm0, %v995_v21, 0.0  ;;  %v997_v24 = vpop.eup %996 }
 0x20f   : > { %664 = vadd.xlane.f32.xlu1 %v663_v22  ;;  %v662_v26 = vmul.f32 %v997_v24, %v661_v25 }
 0x220   : > { %745 = vperm.xlu1 %993, %v997_v24  }
 0x29c   : > { %v665_v27 = vpop.xlane.xlu1 %664 }
 0x29d   : > { %v666_v28 = vadd.f32 %v665_v27, %v662_v26 }
 0x29f   : > { %668 = vst.msk [vmem:[#allocation3] sm:$0xff] %vm351_vm2, %v666_v28 }
 0x2a0   : > { %v746_v31 = vpop.permute.xlu1 %745 }
 0x2a1   : > { %v748_v32 = vmul.f32 %v746_v31, %v742_v30 }
 0x2a6   : > { %v756_v29 = vld [vmem:[#allocation3] sm:$0xff] }
 0x2a7   : > { %759 = vperm.xlu1 %993, %v756_v29  }
 0x2e1   : > { %v738_v33 = vpop.f32.mrb[0].mxu1 }
 0x2e2   : > { %v749_v34 = vadd.f32 %v748_v32, %v738_v33  ;;  %v947_v35 = vpop.f32.mrb[1].mxu1 }
 0x2e4   : > { %750 = vst.msk [vmem:[#allocation4] sm:$0xff] %vm354_vm0, %v749_v34 }
 0x2eb   : > { %v755_v38 = vld [vmem:[#allocation4] sm:$0xff] }
 0x326   : > { %v760_v36 = vpop.permute.xlu1 %759 }
 0x327   : > { %998 = vrcp.f32 %v760_v36 }
 0x331   : > { %v999_v37 = vpop.eup %998 }
 0x332   : > { %v763_v39 = vmul.f32 %v999_v37, %v755_v38 }
 0x334   : > { %765 = vst.msk [vmem:[%s346_s6] sm:$0xff] %vm354_vm0, %v763_v39 }
 0x335 PF: > { %s13_s16 = sadd.s32 1, %s1038_s16   ;;  %s1143_s12 = smov %s1030_s14 }
 0x336   : > { %p10_p7 = scmp.ge.s32.totalorder %s13_s16, 10   ;;  %s1144_s13 = smov %s1034_s15 }
 0x337   : > { %s1145_s14 = smov %s1148_s17  ;;  %s1146_s15 = smov %s1152_s18 }
 0x338   :  { %12 = sbr.rel (!%p10_p7) target bundleno = 3 (0x3), region = 84 }

</bundles_post_ra>
